<compile_context>
chip_gen: v5e
topology: v5e:2x2
jax: 0.10.0
libtpu: 0.0.40
codegen_flags: <defaults>
</compile_context>

<pallas_src>
import functools
import math

import jax
import jax.numpy as jnp
from jax.experimental import pallas as pl
from jax.experimental.pallas import tpu as pltpu


def _round_up(a: int, b: int) -> int:
    return (a + b - 1) // b * b


# ---------------------------------------------------------------------------
# Stage 1: support = X @ W   (computed ONCE, tiled over node rows)
# ---------------------------------------------------------------------------
def support_kernel(x_ref, w_ref, o_ref):
    o_ref[...] = jnp.dot(
        x_ref[...], w_ref[...], preferred_element_type=jnp.float32
    ).astype(o_ref.dtype)


# ---------------------------------------------------------------------------
# Stage 2: out = A @ support + bias   (row tiles x K-reduction over A columns)
# ---------------------------------------------------------------------------
def adj_matmul_kernel(a_ref, s_ref, b_ref, o_ref, acc_ref):
    k = pl.program_id(1)

    @pl.when(k == 0)
    def _():
        acc_ref[...] = jnp.zeros_like(acc_ref)

    a = a_ref[...]
    if a_ref.dtype != jnp.float32:
        # bf16 adjacency halves the dominant N^2 HBM stream; accumulate in f32.
        a = a.astype(jnp.float32)
    acc_ref[...] += jnp.dot(a, s_ref[...], preferred_element_type=jnp.float32)

    @pl.when(k == pl.num_programs(1) - 1)
    def _():
        o_ref[...] = (acc_ref[...] + b_ref[...]).astype(o_ref.dtype)


@functools.partial(
    jax.jit, static_argnames=("row_tile", "k_tile", "cast_adj_to_bf16")
)
def gcn_forward(x, adj, weight, bias, *, row_tile=256, k_tile=512,
                cast_adj_to_bf16=False):
    """GraphConvolutionLayer.forward(input=x, adjacency_matrix=adj)."""
    n, f_in = x.shape
    f_out = weight.shape[1]
    assert adj.shape == (n, n)

    # Lane-dense output: pad F_out up to a multiple of 128.
    fp = _round_up(f_out, 128)

    # Clamp tiles to the (hardware-granular) problem size, then pad N so the
    # grid divides evenly (instead of asserting divisibility).
    row_tile = min(row_tile, _round_up(n, 8))
    k_tile = min(k_tile, _round_up(n, 128))
    n_pad = _round_up(n, math.lcm(row_tile, k_tile))

    w_p = jnp.pad(weight, ((0, 0), (0, fp - f_out)))
    b_p = jnp.pad(bias, (0, fp - f_out)).reshape(1, fp)
    x_p = jnp.pad(x, ((0, n_pad - n), (0, 0)))
    adj_p = jnp.pad(adj, ((0, n_pad - n), (0, n_pad - n)))
    if cast_adj_to_bf16:
        adj_p = adj_p.astype(jnp.bfloat16)

    row_grid = n_pad // row_tile
    k_grid = n_pad // k_tile

    # ---- Stage 1: support = X @ W (once) ----------------------------------
    support = pl.pallas_call(
        support_kernel,
        out_shape=jax.ShapeDtypeStruct((n_pad, fp), jnp.float32),
        grid_spec=pltpu.PrefetchScalarGridSpec(
            num_scalar_prefetch=0,
            grid=(row_grid,),
            in_specs=[
                pl.BlockSpec((row_tile, f_in), lambda i: (i, 0)),
                pl.BlockSpec((f_in, fp), lambda i: (0, 0)),
            ],
            out_specs=pl.BlockSpec((row_tile, fp), lambda i: (i, 0)),
        ),
        compiler_params=pltpu.CompilerParams(
            dimension_semantics=("parallel",)
        ),
    )(x_p, w_p)

    # ---- Stage 2: out = A @ support + bias --------------------------------
    out_p = pl.pallas_call(
        adj_matmul_kernel,
        out_shape=jax.ShapeDtypeStruct((n_pad, fp), x.dtype),
        grid_spec=pltpu.PrefetchScalarGridSpec(
            num_scalar_prefetch=0,
            grid=(row_grid, k_grid),
            in_specs=[
                # adjacency tile: rows x K-chunk of columns
                pl.BlockSpec((row_tile, k_tile), lambda i, k: (i, k)),
                # matching K-chunk of support rows
                pl.BlockSpec((k_tile, fp), lambda i, k: (k, 0)),
                # bias (tiny, replicated)
                pl.BlockSpec((1, fp), lambda i, k: (0, 0)),
            ],
            out_specs=pl.BlockSpec((row_tile, fp), lambda i, k: (i, 0)),
            scratch_shapes=[pltpu.VMEM((row_tile, fp), jnp.float32)],
        ),
        compiler_params=pltpu.CompilerParams(
            dimension_semantics=("parallel", "arbitrary")
        ),
    )(adj_p, support, b_p)

    return out_p[:n, :f_out]


def xavier_uniform(key, shape, dtype=jnp.float32):
    fan_in, fan_out = shape
    bound = (6.0 / (fan_in + fan_out)) ** 0.5
    return jax.random.uniform(key, shape, dtype=dtype, minval=-bound, maxval=bound)


if __name__ == "__main__":
    # Small shapes consistent with the module: N nodes, in_features -> out_features.
    N, F_IN, F_OUT = 128, 64, 32

    key = jax.random.PRNGKey(0)
    k_x, k_w, k_adj = jax.random.split(key, 3)

    # Deterministic parameter init (matches nn.init.xavier_uniform_ / zeros_ shapes).
    weight = xavier_uniform(k_w, (F_IN, F_OUT))
    bias = jnp.zeros((F_OUT,), dtype=jnp.float32)

    # Node features.
    x = jax.random.normal(k_x, (N, F_IN), dtype=jnp.float32)

    # Synthetic symmetric 0/1 adjacency (stands in for extractEdges('data.txt')).
    # TODO(synk): real adjacency comes from a file via networkx; we build a
    # deterministic one in-script instead.
    upper = (jax.random.uniform(k_adj, (N, N)) < 0.05).astype(jnp.float32)
    adj = jnp.triu(upper, k=1)
    adj = adj + adj.T

    # bf16 adjacency is exact here (entries are 0/1) and halves the HBM stream.
    out = gcn_forward(x, adj, weight, bias, cast_adj_to_bf16=True)
    out = jax.block_until_ready(out)

    # Reference check against plain JAX (same math as the PyTorch forward).
    ref = adj @ (x @ weight) + bias
    assert out.shape == (N, F_OUT)
    assert jnp.allclose(out, ref, atol=1e-4, rtol=1e-4)

    print("KERNEL_OK")
</pallas_src>

<mosaic_0001>
module attributes {stable_mosaic.version = 11 : i64} {
  func.func @support_kernel(%arg0: i32, %arg1: memref<128x64xf32, #tpu.memory_space<vmem>>, %arg2: memref<64x128xf32, #tpu.memory_space<vmem>>, %arg3: memref<128x128xf32, #tpu.memory_space<vmem>>) attributes {dimension_semantics = [#tpu.dimension_semantics<parallel>], iteration_bounds = array<i64: 1>, scalar_prefetch = 0 : i64, scratch_operands = 0 : i64, tpu.core_type = #tpu.core_type<tc>, window_params = [{transform_indices = @transform_0, window_bounds = array<i64: 128, 64>}, {pipeline_mode = #tpu.pipeline_mode<synchronous>, transform_indices = @transform_1, window_bounds = array<i64: 64, 128>}, {transform_indices = @transform_2, window_bounds = array<i64: 128, 128>}]} {
    %c0 = arith.constant 0 : index
    %c0_0 = arith.constant 0 : index
    %0 = vector.load %arg1[%c0, %c0_0] : memref<128x64xf32, #tpu.memory_space<vmem>>, vector<128x64xf32>
    %c0_1 = arith.constant 0 : index
    %c0_2 = arith.constant 0 : index
    %1 = vector.load %arg2[%c0_1, %c0_2] : memref<64x128xf32, #tpu.memory_space<vmem>>, vector<64x128xf32>
    %cst = arith.constant dense<0.000000e+00> : vector<128x128xf32>
    %2 = tpu.matmul %0, %1, %cst {dimension_numbers = #tpu.dot_dimension_numbers<[1], [0], [0], [1], [0, 0, 1, 1], [], []>} : vector<128x64xf32>, vector<64x128xf32>, vector<128x128xf32> -> vector<128x128xf32>
    %c0_3 = arith.constant 0 : index
    %c0_4 = arith.constant 0 : index
    %3 = vector.load %arg3[%c0_3, %c0_4] : memref<128x128xf32, #tpu.memory_space<vmem>>, vector<128x128xf32>
    tpu.vector_store %arg3[%c0_3, %c0_4], %2 {strides = array<i32>} : memref<128x128xf32, #tpu.memory_space<vmem>>, vector<128x128xf32>,
    return
  }
  func.func @transform_0(%arg0: i32) -> (i32, i32) {
    %c0_i32 = arith.constant 0 : i32
    %c0_i32_0 = arith.constant 0 : i32
    return %arg0, %c0_i32 : i32, i32
  }
  func.func @transform_1(%arg0: i32) -> (i32, i32) {
    %c0_i32 = arith.constant 0 : i32
    %c0_i32_0 = arith.constant 0 : i32
    %c0_i32_1 = arith.constant 0 : i32
    return %c0_i32, %c0_i32_0 : i32, i32
  }
  func.func @transform_2(%arg0: i32) -> (i32, i32) {
    %c0_i32 = arith.constant 0 : i32
    %c0_i32_0 = arith.constant 0 : i32
    return %arg0, %c0_i32 : i32, i32
  }
}

module attributes {stable_mosaic.version = 11 : i64} {
  func.func @adj_matmul_kernel(%arg0: i32, %arg1: i32, %arg2: memref<128x128xbf16, #tpu.memory_space<vmem>>, %arg3: memref<128x128xf32, #tpu.memory_space<vmem>>, %arg4: memref<1x128xf32, #tpu.memory_space<vmem>>, %arg5: memref<128x128xf32, #tpu.memory_space<vmem>>, %arg6: memref<128x128xf32, #tpu.memory_space<vmem>>) attributes {dimension_semantics = [#tpu.dimension_semantics<parallel>, #tpu.dimension_semantics<arbitrary>], iteration_bounds = array<i64: 1, 1>, scalar_prefetch = 0 : i64, scratch_operands = 1 : i64, tpu.core_type = #tpu.core_type<tc>, window_params = [{transform_indices = @transform_0, window_bounds = array<i64: 128, 128>}, {transform_indices = @transform_1, window_bounds = array<i64: 128, 128>}, {pipeline_mode = #tpu.pipeline_mode<synchronous>, transform_indices = @transform_2, window_bounds = array<i64: 1, 128>}, {transform_indices = @transform_3, window_bounds = array<i64: 128, 128>}]} {
    %c0_i32 = arith.constant 0 : i32
    %0 = arith.cmpi eq, %arg1, %c0_i32 : i32
    %1 = arith.extui %0 : i1 to i32
    %c0_i32_0 = arith.constant 0 : i32
    %2 = arith.cmpi ne, %1, %c0_i32_0 : i32
    scf.if %2 {
      %cst_10 = arith.constant 0.000000e+00 : f32
      %13 = vector.broadcast %cst_10 : f32 to vector<128x128xf32>
      %c0_11 = arith.constant 0 : index
      %c0_12 = arith.constant 0 : index
      %14 = vector.load %arg6[%c0_11, %c0_12] : memref<128x128xf32, #tpu.memory_space<vmem>>, vector<128x128xf32>
      tpu.vector_store %arg6[%c0_11, %c0_12], %13 {strides = array<i32>} : memref<128x128xf32, #tpu.memory_space<vmem>>, vector<128x128xf32>,
    } else {
    }
    %c0 = arith.constant 0 : index
    %c0_1 = arith.constant 0 : index
    %3 = vector.load %arg2[%c0, %c0_1] : memref<128x128xbf16, #tpu.memory_space<vmem>>, vector<128x128xbf16>
    %4 = arith.extf %3 : vector<128x128xbf16> to vector<128x128xf32>
    %c0_2 = arith.constant 0 : index
    %c0_3 = arith.constant 0 : index
    %5 = vector.load %arg6[%c0_2, %c0_3] : memref<128x128xf32, #tpu.memory_space<vmem>>, vector<128x128xf32>
    %c0_4 = arith.constant 0 : index
    %c0_5 = arith.constant 0 : index
    %6 = vector.load %arg3[%c0_4, %c0_5] : memref<128x128xf32, #tpu.memory_space<vmem>>, vector<128x128xf32>
    %cst = arith.constant dense<0.000000e+00> : vector<128x128xf32>
    %7 = tpu.matmul %4, %6, %cst {dimension_numbers = #tpu.dot_dimension_numbers<[1], [0], [0], [1], [0, 0, 1, 1], [], []>} : vector<128x128xf32>, vector<128x128xf32>, vector<128x128xf32> -> vector<128x128xf32>
    %8 = arith.addf %5, %7 : vector<128x128xf32>
    %c0_6 = arith.constant 0 : index
    %c0_7 = arith.constant 0 : index
    %9 = vector.load %arg6[%c0_6, %c0_7] : memref<128x128xf32, #tpu.memory_space<vmem>>, vector<128x128xf32>
    tpu.vector_store %arg6[%c0_6, %c0_7], %8 {strides = array<i32>} : memref<128x128xf32, #tpu.memory_space<vmem>>, vector<128x128xf32>,
    %c0_i32_8 = arith.constant 0 : i32
    %10 = arith.cmpi eq, %arg1, %c0_i32_8 : i32
    %11 = arith.extui %10 : i1 to i32
    %c0_i32_9 = arith.constant 0 : i32
    %12 = arith.cmpi ne, %11, %c0_i32_9 : i32
    scf.if %12 {
      %c0_10 = arith.constant 0 : index
      %c0_11 = arith.constant 0 : index
      %13 = vector.load %arg6[%c0_10, %c0_11] : memref<128x128xf32, #tpu.memory_space<vmem>>, vector<128x128xf32>
      %c0_12 = arith.constant 0 : index
      %c0_13 = arith.constant 0 : index
      %14 = vector.load %arg4[%c0_12, %c0_13] : memref<1x128xf32, #tpu.memory_space<vmem>>, vector<1x128xf32>
      %15 = vector.broadcast %14 : vector<1x128xf32> to vector<128x128xf32>
      %16 = arith.addf %13, %15 : vector<128x128xf32>
      %c0_14 = arith.constant 0 : index
      %c0_15 = arith.constant 0 : index
      %17 = vector.load %arg5[%c0_14, %c0_15] : memref<128x128xf32, #tpu.memory_space<vmem>>, vector<128x128xf32>
      tpu.vector_store %arg5[%c0_14, %c0_15], %16 {strides = array<i32>} : memref<128x128xf32, #tpu.memory_space<vmem>>, vector<128x128xf32>,
    } else {
    }
    return
  }
  func.func @transform_0(%arg0: i32, %arg1: i32) -> (i32, i32) {
    %c0_i32 = arith.constant 0 : i32
    return %arg0, %arg1 : i32, i32
  }
  func.func @transform_1(%arg0: i32, %arg1: i32) -> (i32, i32) {
    %c0_i32 = arith.constant 0 : i32
    %c0_i32_0 = arith.constant 0 : i32
    return %arg1, %c0_i32 : i32, i32
  }
  func.func @transform_2(%arg0: i32, %arg1: i32) -> (i32, i32) {
    %c0_i32 = arith.constant 0 : i32
    %c0_i32_0 = arith.constant 0 : i32
    %c0_i32_1 = arith.constant 0 : i32
    return %c0_i32, %c0_i32_0 : i32, i32
  }
  func.func @transform_3(%arg0: i32, %arg1: i32) -> (i32, i32) {
    %c0_i32 = arith.constant 0 : i32
    %c0_i32_0 = arith.constant 0 : i32
    return %arg0, %c0_i32 : i32, i32
  }
}

</mosaic_0001>

<bundles_post_ra>
// kernel: gcn_forward.2
= control target key start
LH: loop header
LB: loop body
LE: loop exit
PB: predicated region body
PF: predicated region fallthrough
CT: control target
= control target key end

     0   :  { %vm35_vm0 = vcmask 523264   ;;  %s360_s1 = inlined_call_operand.vmem [shape: f32[64,128], index: 1, kind: input, shape index: {}]   ;;  %s361_s0 = inlined_call_operand.vmem [shape: f32[128,64], index: 0, kind: input, shape index: {}]   ;;  %s362_s2 = inlined_call_operand.vmem [shape: f32[128,128], index: 2, kind: output, shape index: {}]  }
   0x1   :  { %v34_v0 = vld [vmem:[%s360_s1 + $0x38] sm:$0xff]  ;;  %v33_v1 = vld [vmem:[%s360_s1 + $0x30] sm:$0xff]  ;;  %v32_v2 = vld [vmem:[%s360_s1 + $0x28] sm:$0xff] }
   0x2   :  { %186 = vmatpush.msra.mxu2 %v34_v0  ;;  %187 = vmatpush.msra.mxu3 %v34_v0  ;;  %v31_v3 = vld [vmem:[%s360_s1 + $0x20] sm:$0xff]  ;;  %v30_v4 = vld [vmem:[%s360_s1 + $0x18] sm:$0xff]  ;;  %v29_v5 = vld [vmem:[%s360_s1 + $0x10] sm:$0xff] }
   0x3   :  { %92 = vmatpush.msra.mxu0 %v34_v0  ;;  %185 = vmatpush.msra.mxu1 %v34_v0  ;;  %v28_v6 = vld [vmem:[%s360_s1 + $0x8] sm:$0xff]  ;;  %v27_v7 = vld [vmem:[%s360_s1] sm:$0xff]  ;;  %v21_v16 = vld [vmem:[%s361_s0 + $0x50] sm:$0xff] }
   0x4   :  { %189 = vmatpush.msra.mxu2 %v33_v1  ;;  %190 = vmatpush.msra.mxu3 %v33_v1  ;;  %v19_v8 = vld [vmem:[%s361_s0 + $0x40] sm:$0xff]  ;;  %v20_v12 = vld [vmem:[%s361_s0 + $0x48] sm:$0xff]  ;;  %v25_v17 = vld [vmem:[%s361_s0 + $0x70] sm:$0xff] }
   0x5   :  { %93 = vmatpush.msra.mxu0 %v33_v1  ;;  %188 = vmatpush.msra.mxu1 %v33_v1  ;;  %v23_v9 = vld [vmem:[%s361_s0 + $0x60] sm:$0xff]  ;;  %v24_v13 = vld [vmem:[%s361_s0 + $0x68] sm:$0xff]  ;;  %v13_v18 = vld [vmem:[%s361_s0 + $0x10] sm:$0xff] }
   0x6   :  { %192 = vmatpush.msra.mxu2 %v32_v2  ;;  %193 = vmatpush.msra.mxu3 %v32_v2  ;;  %v11_v10 = vld [vmem:[%s361_s0] sm:$0xff]  ;;  %v12_v14 = vld [vmem:[%s361_s0 + $0x8] sm:$0xff]  ;;  %v17_v19 = vld [vmem:[%s361_s0 + $0x30] sm:$0xff] }
   0x7   :  { %94 = vmatpush.msra.mxu0 %v32_v2  ;;  %191 = vmatpush.msra.mxu1 %v32_v2  ;;  %v15_v11 = vld [vmem:[%s361_s0 + $0x20] sm:$0xff]  ;;  %v16_v15 = vld [vmem:[%s361_s0 + $0x28] sm:$0xff]  ;;  %v22_v20 = vld [vmem:[%s361_s0 + $0x58] sm:$0xff] }
   0x8   :  { %195 = vmatpush.msra.mxu2 %v31_v3  ;;  %196 = vmatpush.msra.mxu3 %v31_v3  ;;  %v26_v21 = vld [vmem:[%s361_s0 + $0x78] sm:$0xff] }
   0x9   :  { %95 = vmatpush.msra.mxu0 %v31_v3  ;;  %194 = vmatpush.msra.mxu1 %v31_v3  ;;  %v14_v22 = vld [vmem:[%s361_s0 + $0x18] sm:$0xff] }
   0xa   :  { %198 = vmatpush.msra.mxu2 %v30_v4  ;;  %199 = vmatpush.msra.mxu3 %v30_v4  ;;  %v18_v23 = vld [vmem:[%s361_s0 + $0x38] sm:$0xff] }
   0xb   :  { %96 = vmatpush.msra.mxu0 %v30_v4  ;;  %197 = vmatpush.msra.mxu1 %v30_v4 }
   0xc   :  { %201 = vmatpush.msra.mxu2 %v29_v5  ;;  %202 = vmatpush.msra.mxu3 %v29_v5 }
   0xd   :  { %97 = vmatpush.msra.mxu0 %v29_v5  ;;  %200 = vmatpush.msra.mxu1 %v29_v5 }
   0xe   :  { %204 = vmatpush.msra.mxu2 %v28_v6  ;;  %205 = vmatpush.msra.mxu3 %v28_v6 }
   0xf   :  { %98 = vmatpush.msra.mxu0 %v28_v6  ;;  %203 = vmatpush.msra.mxu1 %v28_v6 }
  0x10   :  { %207 = vmatpush.msra.mxu2 %v27_v7  ;;  %208 = vmatpush.msra.mxu3 %v27_v7 }
  0x11   :  { %177 = vmatmul.msk.f32.vlgmr.msra.gmra.mxu2 %vm35_vm0, %v19_v8  ;;  %181 = vmatmul.msk.f32.vlgmr.msra.gmra.mxu3 %vm35_vm0, %v23_v9 }
  0x12   :  { %99 = vmatpush.msra.mxu0 %v27_v7  ;;  %206 = vmatpush.msra.mxu1 %v27_v7 }
  0x13   :  { %169 = vmatmul.msk.f32.vlgmr.msra.gmra.mxu0 %vm35_vm0, %v11_v10  ;;  %173 = vmatmul.msk.f32.vlgmr.msra.gmra.mxu1 %vm35_vm0, %v15_v11 }
  0x19   :  { %178 = vmatmul.msk.f32.gmra.mxu2 %vm35_vm0, %v20_v12  ;;  %182 = vmatmul.msk.f32.gmra.mxu3 %vm35_vm0, %v24_v13 }
  0x1b   :  { %170 = vmatmul.msk.f32.gmra.mxu0 %vm35_vm0, %v12_v14  ;;  %174 = vmatmul.msk.f32.gmra.mxu1 %vm35_vm0, %v16_v15 }
  0x21   :  { %179 = vmatmul.msk.f32.gmra.mxu2 %vm35_vm0, %v21_v16  ;;  %183 = vmatmul.msk.f32.gmra.mxu3 %vm35_vm0, %v25_v17 }
  0x23   :  { %171 = vmatmul.msk.f32.gmra.mxu0 %vm35_vm0, %v13_v18  ;;  %175 = vmatmul.msk.f32.gmra.mxu1 %vm35_vm0, %v17_v19 }
  0x29   :  { %180 = vmatmul.msk.f32.gmra.mxu2 %vm35_vm0, %v22_v20  ;;  %184 = vmatmul.msk.f32.gmra.mxu3 %vm35_vm0, %v26_v21 }
  0x2b   :  { %172 = vmatmul.msk.f32.gmra.mxu0 %vm35_vm0, %v14_v22  ;;  %176 = vmatmul.msk.f32.gmra.mxu1 %vm35_vm0, %v18_v23 }
  0x90   :  { %v101_v24 = vpop.f32.mrf.mxu0  ;;  %v113_v25 = vpop.f32.mrf.mxu1 }
  0x91   :  { %149 = vst [vmem:[%s362_s2] sm:$0xff] %v101_v24 }
  0x92   :  { %153 = vst [vmem:[%s362_s2 + $0x20] sm:$0xff] %v113_v25 }
  0x94   :  { %v125_v26 = vpop.f32.mrf.mxu2  ;;  %v137_v27 = vpop.f32.mrf.mxu3 }
  0x95   :  { %157 = vst [vmem:[%s362_s2 + $0x40] sm:$0xff] %v125_v26 }
  0x96   :  { %161 = vst [vmem:[%s362_s2 + $0x60] sm:$0xff] %v137_v27 }
  0x98   :  { %v104_v28 = vpop.f32.mrf.mxu0  ;;  %v116_v29 = vpop.f32.mrf.mxu1 }
  0x99   :  { %150 = vst [vmem:[%s362_s2 + $0x8] sm:$0xff] %v104_v28 }
  0x9a   :  { %154 = vst [vmem:[%s362_s2 + $0x28] sm:$0xff] %v116_v29 }
  0x9c   :  { %v128_v30 = vpop.f32.mrf.mxu2  ;;  %v140_v31 = vpop.f32.mrf.mxu3 }
  0x9d   :  { %158 = vst [vmem:[%s362_s2 + $0x48] sm:$0xff] %v128_v30 }
  0x9e   :  { %162 = vst [vmem:[%s362_s2 + $0x68] sm:$0xff] %v140_v31 }
  0xa0   :  { %v107_v32 = vpop.f32.mrf.mxu0  ;;  %v119_v33 = vpop.f32.mrf.mxu1 }
  0xa1   :  { %151 = vst [vmem:[%s362_s2 + $0x10] sm:$0xff] %v107_v32 }
  0xa2   :  { %155 = vst [vmem:[%s362_s2 + $0x30] sm:$0xff] %v119_v33 }
  0xa4   :  { %v131_v34 = vpop.f32.mrf.mxu2  ;;  %v143_v35 = vpop.f32.mrf.mxu3 }
  0xa5   :  { %159 = vst [vmem:[%s362_s2 + $0x50] sm:$0xff] %v131_v34 }
  0xa6   :  { %163 = vst [vmem:[%s362_s2 + $0x70] sm:$0xff] %v143_v35 }
  0xa8   :  { %v110_v36 = vpop.f32.mrf.mxu0  ;;  %v122_v37 = vpop.f32.mrf.mxu1 }
  0xa9   :  { %152 = vst [vmem:[%s362_s2 + $0x18] sm:$0xff] %v110_v36 }
  0xaa   :  { %156 = vst [vmem:[%s362_s2 + $0x38] sm:$0xff] %v122_v37 }
  0xac   :  { %v134_v38 = vpop.f32.mrf.mxu2  ;;  %v146_v39 = vpop.f32.mrf.mxu3 }
  0xad   :  { %160 = vst [vmem:[%s362_s2 + $0x58] sm:$0xff] %v134_v38 }
  0xae   :  { %164 = vst [vmem:[%s362_s2 + $0x78] sm:$0xff] %v146_v39 }

// kernel: gcn_forward.3
= control target key start
LH: loop header
LB: loop body
LE: loop exit
PB: predicated region body
PF: predicated region fallthrough
CT: control target
= control target key end

     0   :  { %s485_s1 = inlined_call_operand.vmem [shape: f32[128,128], index: 1, kind: input, shape index: {}]   ;;  %s486_s2 = inlined_call_operand.vmem [shape: f32[1,128], index: 2, kind: input, shape index: {}]   ;;  %s487_s0 = inlined_call_operand.vmem [shape: bf16[128,128], index: 0, kind: input, shape index: {}]   ;;  %s488_s3 = inlined_call_operand.vmem [shape: f32[128,128], index: 3, kind: output, shape index: {}]  }
   0x1   :  { %v97_v0 = vld [vmem:[%s485_s1 + $0x78] sm:$0xff]  ;;  %v96_v1 = vld [vmem:[%s485_s1 + $0x70] sm:$0xff]  ;;  %v95_v2 = vld [vmem:[%s485_s1 + $0x68] sm:$0xff] }
   0x2   :  { %294 = vmatpush.msra.mxu2 %v97_v0  ;;  %295 = vmatpush.msra.mxu3 %v97_v0  ;;  %v94_v3 = vld [vmem:[%s485_s1 + $0x60] sm:$0xff]  ;;  %v93_v4 = vld [vmem:[%s485_s1 + $0x58] sm:$0xff]  ;;  %v92_v5 = vld [vmem:[%s485_s1 + $0x50] sm:$0xff] }
   0x3   :  { %98 = vmatpush.msra.mxu0 %v97_v0  ;;  %293 = vmatpush.msra.mxu1 %v97_v0  ;;  %v91_v6 = vld [vmem:[%s485_s1 + $0x48] sm:$0xff]  ;;  %v90_v7 = vld [vmem:[%s485_s1 + $0x40] sm:$0xff]  ;;  %v89_v8 = vld [vmem:[%s485_s1 + $0x38] sm:$0xff] }
   0x4   :  { %297 = vmatpush.msra.mxu2 %v96_v1  ;;  %298 = vmatpush.msra.mxu3 %v96_v1  ;;  %v88_v9 = vld [vmem:[%s485_s1 + $0x30] sm:$0xff]  ;;  %v87_v10 = vld [vmem:[%s485_s1 + $0x28] sm:$0xff]  ;;  %v86_v11 = vld [vmem:[%s485_s1 + $0x20] sm:$0xff] }
   0x5   :  { %99 = vmatpush.msra.mxu0 %v96_v1  ;;  %296 = vmatpush.msra.mxu1 %v96_v1  ;;  %v85_v12 = vld [vmem:[%s485_s1 + $0x18] sm:$0xff]  ;;  %v84_v13 = vld [vmem:[%s485_s1 + $0x10] sm:$0xff]  ;;  %v289_v14 = vld [vmem:[%s487_s0 + $0x20] sm:$0xff]  }
   0x6   :  { %300 = vmatpush.msra.mxu2 %v95_v2  ;;  %301 = vmatpush.msra.mxu3 %v95_v2  ;;  %v291_v15 = vld [vmem:[%s487_s0 + $0x30] sm:$0xff]   ;;  %v83_v16 = vld [vmem:[%s485_s1 + $0x8] sm:$0xff]  ;;  %v255_v17 = vld [vmem:[%s487_s0] sm:$0xff]   ;;  %v272_v20 = vunpack.c.l.bf16 %v289_v14  ;;  %v273_v24 = vunpack.c.h.bf16 %v289_v14 }
   0x7   :  { %100 = vmatpush.msra.mxu0 %v95_v2  ;;  %299 = vmatpush.msra.mxu1 %v95_v2  ;;  %v287_v18 = vld [vmem:[%s487_s0 + $0x10] sm:$0xff]   ;;  %v82_v19 = vld [vmem:[%s485_s1] sm:$0xff]  ;;  %v280_v21 = vunpack.c.l.bf16 %v291_v15  ;;  %v256_v22 = vunpack.c.l.bf16 %v255_v17  ;;  %v281_v25 = vunpack.c.h.bf16 %v291_v15  ;;  %v257_v26 = vunpack.c.h.bf16 %v255_v17  ;;  %v290_v28 = vld [vmem:[%s487_s0 + $0x28] sm:$0xff]  }
   0x8   :  { %303 = vmatpush.msra.mxu2 %v94_v3  ;;  %304 = vmatpush.msra.mxu3 %v94_v3  ;;  %v264_v23 = vunpack.c.l.bf16 %v287_v18  ;;  %v265_v27 = vunpack.c.h.bf16 %v287_v18  ;;  %v292_v29 = vld [vmem:[%s487_s0 + $0x38] sm:$0xff]   ;;  %v286_v30 = vld [vmem:[%s487_s0 + $0x8] sm:$0xff]   ;;  %v276_v32 = vunpack.c.l.bf16 %v290_v28  ;;  %v277_v36 = vunpack.c.h.bf16 %v290_v28  ;;  %v341_v40 = vld [vmem:[%s486_s2] ss:$0 sm:$0xff] }
   0x9   :  { %101 = vmatpush.msra.mxu0 %v94_v3  ;;  %302 = vmatpush.msra.mxu1 %v94_v3  ;;  %v288_v31 = vld [vmem:[%s487_s0 + $0x18] sm:$0xff]   ;;  %v284_v33 = vunpack.c.l.bf16 %v292_v29  ;;  %v260_v34 = vunpack.c.l.bf16 %v286_v30  ;;  %v285_v37 = vunpack.c.h.bf16 %v292_v29  ;;  %v261_v38 = vunpack.c.h.bf16 %v286_v30 }
   0xa   :  { %306 = vmatpush.msra.mxu2 %v93_v4  ;;  %307 = vmatpush.msra.mxu3 %v93_v4  ;;  %v268_v35 = vunpack.c.l.bf16 %v288_v31  ;;  %v269_v39 = vunpack.c.h.bf16 %v288_v31 }
   0xb   :  { %102 = vmatpush.msra.mxu0 %v93_v4  ;;  %305 = vmatpush.msra.mxu1 %v93_v4 }
   0xc   :  { %309 = vmatpush.msra.mxu2 %v92_v5  ;;  %310 = vmatpush.msra.mxu3 %v92_v5 }
   0xd   :  { %103 = vmatpush.msra.mxu0 %v92_v5  ;;  %308 = vmatpush.msra.mxu1 %v92_v5 }
   0xe   :  { %312 = vmatpush.msra.mxu2 %v91_v6  ;;  %313 = vmatpush.msra.mxu3 %v91_v6 }
   0xf   :  { %104 = vmatpush.msra.mxu0 %v91_v6  ;;  %311 = vmatpush.msra.mxu1 %v91_v6 }
  0x10   :  { %315 = vmatpush.msra.mxu2 %v90_v7  ;;  %316 = vmatpush.msra.mxu3 %v90_v7 }
  0x11   :  { %105 = vmatpush.msra.mxu0 %v90_v7  ;;  %314 = vmatpush.msra.mxu1 %v90_v7 }
  0x12   :  { %318 = vmatpush.msra.mxu2 %v89_v8  ;;  %319 = vmatpush.msra.mxu3 %v89_v8 }
  0x13   :  { %106 = vmatpush.msra.mxu0 %v89_v8  ;;  %317 = vmatpush.msra.mxu1 %v89_v8 }
  0x14   :  { %321 = vmatpush.msra.mxu2 %v88_v9  ;;  %322 = vmatpush.msra.mxu3 %v88_v9 }
  0x15   :  { %107 = vmatpush.msra.mxu0 %v88_v9  ;;  %320 = vmatpush.msra.mxu1 %v88_v9 }
  0x16   :  { %324 = vmatpush.msra.mxu2 %v87_v10  ;;  %325 = vmatpush.msra.mxu3 %v87_v10 }
  0x17   :  { %108 = vmatpush.msra.mxu0 %v87_v10  ;;  %323 = vmatpush.msra.mxu1 %v87_v10 }
  0x18   :  { %327 = vmatpush.msra.mxu2 %v86_v11  ;;  %328 = vmatpush.msra.mxu3 %v86_v11 }
  0x19   :  { %109 = vmatpush.msra.mxu0 %v86_v11  ;;  %326 = vmatpush.msra.mxu1 %v86_v11 }
  0x1a   :  { %330 = vmatpush.msra.mxu2 %v85_v12  ;;  %331 = vmatpush.msra.mxu3 %v85_v12 }
  0x1b   :  { %110 = vmatpush.msra.mxu0 %v85_v12  ;;  %329 = vmatpush.msra.mxu1 %v85_v12 }
  0x1c   :  { %333 = vmatpush.msra.mxu2 %v84_v13  ;;  %334 = vmatpush.msra.mxu3 %v84_v13 }
  0x1d   :  { %111 = vmatpush.msra.mxu0 %v84_v13  ;;  %332 = vmatpush.msra.mxu1 %v84_v13 }
  0x1e   :  { %336 = vmatpush.msra.mxu2 %v83_v16  ;;  %337 = vmatpush.msra.mxu3 %v83_v16 }
  0x1f   :  { %112 = vmatpush.msra.mxu0 %v83_v16  ;;  %335 = vmatpush.msra.mxu1 %v83_v16 }
  0x20   :  { %339 = vmatpush.msra.mxu2 %v82_v19  ;;  %340 = vmatpush.msra.mxu3 %v82_v19 }
  0x21   :  { %138 = vmatmul.f32.vlgmr.msra.gmra.mxu2 %v272_v20  ;;  %150 = vmatmul.f32.vlgmr.msra.gmra.mxu3 %v280_v21 }
  0x22   :  { %113 = vmatpush.msra.mxu0 %v82_v19  ;;  %338 = vmatpush.msra.mxu1 %v82_v19 }
  0x23   :  { %114 = vmatmul.f32.vlgmr.msra.gmra.mxu0 %v256_v22  ;;  %126 = vmatmul.f32.vlgmr.msra.gmra.mxu1 %v264_v23 }
  0x29   :  { %141 = vmatmul.f32.gmra.mxu2 %v273_v24  ;;  %153 = vmatmul.f32.gmra.mxu3 %v281_v25 }
  0x2b   :  { %117 = vmatmul.f32.gmra.mxu0 %v257_v26  ;;  %129 = vmatmul.f32.gmra.mxu1 %v265_v27 }
  0x31   :  { %144 = vmatmul.f32.gmra.mxu2 %v276_v32  ;;  %156 = vmatmul.f32.gmra.mxu3 %v284_v33 }
  0x33   :  { %120 = vmatmul.f32.gmra.mxu0 %v260_v34  ;;  %132 = vmatmul.f32.gmra.mxu1 %v268_v35 }
  0x39   :  { %147 = vmatmul.f32.gmra.mxu2 %v277_v36  ;;  %159 = vmatmul.f32.gmra.mxu3 %v285_v37 }
  0x3b   :  { %123 = vmatmul.f32.gmra.mxu0 %v261_v38  ;;  %135 = vmatmul.f32.gmra.mxu1 %v269_v39 }
  0xa0   :  { %v115_v41 = vpop.f32.mrf.mxu0  ;;  %v127_v42 = vpop.f32.mrf.mxu1 }
  0xa1   :  { %v218_v43 = vadd.f32 %v341_v40, %v115_v41  ;;  %v222_v44 = vadd.f32 %v341_v40, %v127_v42 }
  0xa3   :  { %234 = vst [vmem:[%s488_s3] sm:$0xff] %v218_v43 }
  0xa4   :  { %238 = vst [vmem:[%s488_s3 + $0x20] sm:$0xff] %v222_v44  ;;  %v139_v45 = vpop.f32.mrf.mxu2  ;;  %v151_v46 = vpop.f32.mrf.mxu3 }
  0xa5   :  { %v226_v47 = vadd.f32 %v341_v40, %v139_v45  ;;  %v230_v48 = vadd.f32 %v341_v40, %v151_v46 }
  0xa7   :  { %242 = vst [vmem:[%s488_s3 + $0x40] sm:$0xff] %v226_v47 }
  0xa8   :  { %246 = vst [vmem:[%s488_s3 + $0x60] sm:$0xff] %v230_v48  ;;  %v118_v49 = vpop.f32.mrf.mxu0  ;;  %v130_v50 = vpop.f32.mrf.mxu1 }
  0xa9   :  { %v219_v51 = vadd.f32 %v341_v40, %v118_v49  ;;  %v223_v52 = vadd.f32 %v341_v40, %v130_v50 }
  0xab   :  { %235 = vst [vmem:[%s488_s3 + $0x8] sm:$0xff] %v219_v51 }
  0xac   :  { %239 = vst [vmem:[%s488_s3 + $0x28] sm:$0xff] %v223_v52  ;;  %v142_v53 = vpop.f32.mrf.mxu2  ;;  %v154_v54 = vpop.f32.mrf.mxu3 }
  0xad   :  { %v227_v55 = vadd.f32 %v341_v40, %v142_v53  ;;  %v231_v56 = vadd.f32 %v341_v40, %v154_v54 }
  0xaf   :  { %243 = vst [vmem:[%s488_s3 + $0x48] sm:$0xff] %v227_v55 }
  0xb0   :  { %247 = vst [vmem:[%s488_s3 + $0x68] sm:$0xff] %v231_v56  ;;  %v121_v57 = vpop.f32.mrf.mxu0  ;;  %v133_v58 = vpop.f32.mrf.mxu1 }
  0xb1   :  { %v220_v59 = vadd.f32 %v341_v40, %v121_v57  ;;  %v224_v60 = vadd.f32 %v341_v40, %v133_v58 }
  0xb3   :  { %236 = vst [vmem:[%s488_s3 + $0x10] sm:$0xff] %v220_v59 }
  0xb4   :  { %240 = vst [vmem:[%s488_s3 + $0x30] sm:$0xff] %v224_v60  ;;  %v145_v61 = vpop.f32.mrf.mxu2  ;;  %v157_v62 = vpop.f32.mrf.mxu3 }
  0xb5   :  { %v228_v63 = vadd.f32 %v341_v40, %v145_v61  ;;  %v232_v0 = vadd.f32 %v341_v40, %v157_v62 }
  0xb7   :  { %244 = vst [vmem:[%s488_s3 + $0x50] sm:$0xff] %v228_v63 }
  0xb8   :  { %248 = vst [vmem:[%s488_s3 + $0x70] sm:$0xff] %v232_v0  ;;  %v124_v1 = vpop.f32.mrf.mxu0  ;;  %v136_v2 = vpop.f32.mrf.mxu1 }
  0xb9   :  { %v221_v3 = vadd.f32 %v341_v40, %v124_v1  ;;  %v225_v4 = vadd.f32 %v341_v40, %v136_v2 }
  0xbb   :  { %237 = vst [vmem:[%s488_s3 + $0x18] sm:$0xff] %v221_v3 }
  0xbc   :  { %241 = vst [vmem:[%s488_s3 + $0x38] sm:$0xff] %v225_v4  ;;  %v148_v5 = vpop.f32.mrf.mxu2  ;;  %v160_v6 = vpop.f32.mrf.mxu3 }
  0xbd   :  { %v229_v7 = vadd.f32 %v341_v40, %v148_v5  ;;  %v233_v8 = vadd.f32 %v341_v40, %v160_v6 }
  0xbf   :  { %245 = vst [vmem:[%s488_s3 + $0x58] sm:$0xff] %v229_v7 }
  0xc0   :  { %249 = vst [vmem:[%s488_s3 + $0x78] sm:$0xff] %v233_v8 }

</bundles_post_ra>
